<compile_context>
chip_gen: v7x
topology: tpu7x:2x2x1
jax: 0.10.0
libtpu: 0.0.40
codegen_flags: <defaults>
</compile_context>

<pallas_src>
import jax
import jax.numpy as jnp
from jax.experimental import pallas as pl
from jax.experimental.pallas import tpu as pltpu


def _render_loss_kernel(feat_ref, wt_ref, b_ref, img_ref, msk_ref,
                        pred_ref, abs_ref, sq_ref):
    """One (batch, lane-tile) grid point, channel-major.

    feat_ref: (C_in, tm) bf16   neural-texture features
    wt_ref:   (4, C_in)  bf16   render-head weight (pre-transposed, resident)
    b_ref:    (4, 1)     f32    render-head bias (resident)
    img_ref:  (3, tm)    bf16   batch['img'] for this batch element / tile
    msk_ref:  (1, tm)    bf16   batch['msk'] (0/1, exact in bf16)
    pred_ref: (4, tm)    bf16   merged output  [rgb(3ch) ; mask(1ch)]  (lane-dense store)
    abs_ref / sq_ref: (1,1,1) f32 per-tile partial sums (reduced in JAX afterwards)
    """
    # renderer hot path: 1x1 conv as MXU matmul (bf16 in, f32 accumulate)
    y = jnp.dot(wt_ref[...], feat_ref[...],
                preferred_element_type=jnp.float32)              # (4, tm) f32
    # sigmoid(x) = 0.5*tanh(0.5*x)+0.5 -> single EUP push per element (v7x co-bottleneck fix)
    y = 0.5 * jnp.tanh(0.5 * (y + b_ref[...])) + 0.5
    pred_ref[...] = y.astype(pred_ref.dtype)                     # bf16 lane-dense store

    # loss hot path (all f32): single full-(4,tm) diff, two cross-lane reductions.
    img = img_ref[...].astype(jnp.float32)                       # (3, tm)
    m = msk_ref[...].astype(jnp.float32)                         # (1, tm)
    tgt = jnp.concatenate([img, m], axis=0)                      # (4, tm)
    row = jax.lax.broadcasted_iota(jnp.int32, (4, 1), 0)
    mfac = jnp.where(row < 3, m, 1.0)                            # msk on rgb rows, 1 on mask row
    d = (y - tgt) * mfac                                         # == cat(rgb*m - img*m, mask - m)

    abs_ref[...] = jnp.sum(jnp.abs(d)).reshape(1, 1, 1)
    sq_ref[...] = jnp.sum(d * d).reshape(1, 1, 1)


def _pick_row_tile(hw, tm_max):
    """Largest lane tile <= tm_max: either the full H*W extent or a multiple of 128 dividing it."""
    cap = min(tm_max, hw)
    if cap >= hw:
        return hw                     # single full-extent tile (any size allowed)
    t = (cap // 128) * 128
    while t >= 128:
        if hw % t == 0:
            return t
        t -= 128
    # TODO(synk): pad H*W up to a tile multiple (with a validity mask) for awkward sizes.
    raise ValueError(f"H*W={hw} has no 128-multiple lane tile <= {tm_max}")


def render_and_loss(feat_cm, wT, b, img_b, msk_b, *, tm_max=65536):
    """feat_cm: (C_in, B*HW) bf16, wT: (4, C_in) bf16, b: (4,1) f32,
    img_b: (B, 3, HW) bf16, msk_b: (B, 1, HW) bf16."""
    C, N = feat_cm.shape
    B, _, HW = img_b.shape
    assert N == B * HW

    cap = tm_max
    if B == 1 and HW >= 256:
        # keep at least 2 grid points so both TensorCores stay busy on 2-TC chips
        cap = min(cap, max(128, HW // 2))
    tm = _pick_row_tile(HW, cap)
    nb = HW // tm

    # VMEM budget: double-buffered bf16 I/O streams + ~6 f32 (4, tm) intermediates.
    bytes_per_px = 2 * 2 * C + 2 * 2 * (3 + 1 + 4) + 6 * 4 * 4
    est = bytes_per_px * tm + (1 << 20)
    vmem_limit = int(min(56 << 20, max(32 << 20, 2 * est)))      # <= v7x 64 MiB physical

    pred, abs_p, sq_p = pl.pallas_call(
        _render_loss_kernel,
        out_shape=(
            jax.ShapeDtypeStruct((B, 4, HW), jnp.bfloat16),      # merged rgb|mask, bf16
            jax.ShapeDtypeStruct((B * nb, 1, 1), jnp.float32),   # per-tile |d| partials
            jax.ShapeDtypeStruct((B * nb, 1, 1), jnp.float32),   # per-tile d^2 partials
        ),
        grid_spec=pltpu.PrefetchScalarGridSpec(
            num_scalar_prefetch=0,
            grid=(B, nb),
            in_specs=[
                pl.BlockSpec((C, tm), lambda bi, j: (0, bi * nb + j)),   # features, lane-dense
                pl.BlockSpec((4, C), lambda bi, j: (0, 0)),              # weight, resident
                pl.BlockSpec((4, 1), lambda bi, j: (0, 0)),              # bias, resident
                pl.BlockSpec((None, 3, tm), lambda bi, j: (bi, 0, j)),   # img (bf16)
                pl.BlockSpec((None, 1, tm), lambda bi, j: (bi, 0, j)),   # msk (bf16)
            ],
            out_specs=[
                pl.BlockSpec((None, 4, tm), lambda bi, j: (bi, 0, j)),   # lane-dense bf16 stores
                pl.BlockSpec((1, 1, 1), lambda bi, j: (bi * nb + j, 0, 0)),
                pl.BlockSpec((1, 1, 1), lambda bi, j: (bi * nb + j, 0, 0)),
            ],
        ),
        # independent tiles + per-tile partials -> both grid axes parallel (megacore/2-TC)
        compiler_params=pltpu.CompilerParams(
            dimension_semantics=("parallel", "parallel"),
            vmem_limit_bytes=vmem_limit),
    )(feat_cm, wT, b, img_b, msk_b)
    return pred, abs_p, sq_p


class NetworkWrapperPallas:
    """Pallas/JAX equivalent of lib/train/trainers/nt.py::NetworkWrapper."""

    def __init__(self, tex, w, b, *, tm_max=65536):
        t = jnp.asarray(tex)
        self.T = t.shape[0]
        C = t.shape[2]
        # one-time conversion: channel-major, flattened texel axis, bf16
        self.tex_cm = jnp.transpose(t, (2, 0, 1)).reshape(C, self.T * self.T).astype(jnp.bfloat16)
        self.wT = jnp.asarray(w).T.astype(jnp.bfloat16)                   # (4, C_in)
        self.b_cm = jnp.asarray(b, jnp.float32).reshape(4, 1)             # (4, 1)
        self.tm_max = tm_max

    def __call__(self, batch):
        uv = batch['uv']                          # (B, 2, H, W), values in [0, 1]
        img = batch['img']                        # (B, 3, H, W)
        msk = batch['msk']                        # (B, H, W)
        B, _, H, W = uv.shape
        HW = H * W
        T = self.T

        # --- renderer.render glue: nearest-neighbor neural-texture sampling, emitted
        #     channel-major bf16 (no transpose: column order is already b-major).
        # TODO(synk): real renderer uses bilinear grid_sample + a U-Net; also fold this
        #             gather into the kernel (texture resident in VMEM) to drop an HBM pass.
        u = jnp.clip(jnp.round(uv[:, 0] * (T - 1)).astype(jnp.int32), 0, T - 1)
        v = jnp.clip(jnp.round(uv[:, 1] * (T - 1)).astype(jnp.int32), 0, T - 1)
        flat_idx = (v * T + u).reshape(-1)                                # (B*HW,)
        feat_cm = jnp.take(self.tex_cm, flat_idx, axis=1)                 # (C_in, B*HW) bf16

        img_b = img.reshape(B, 3, HW).astype(jnp.bfloat16)                # free reshape, no transpose
        msk_b = msk.reshape(B, 1, HW).astype(jnp.bfloat16)                # 0/1 -> exact in bf16

        pred, abs_p, sq_p = render_and_loss(
            feat_cm, self.wT, self.b_cm, img_b, msk_b, tm_max=self.tm_max)

        # Perceptual_loss(x, target) simplified: loss1 = mean L1, loss2 = mean MSE over
        # x = cat([rgb*msk, ret['mask']]) vs target = cat([img*msk, msk]).
        count = jnp.float32(B * HW * 4)
        loss1 = jnp.sum(abs_p) / count
        loss2 = jnp.sum(sq_p) / count
        # TODO(synk): loss3 (VGG perceptual term) omitted; it is unused in `loss`.
        loss = loss1 + loss2

        # pred is (B, 4, HW): slices + reshapes only, no transposes
        rgb = pred[:, 0:3].reshape(B, 3, H, W)
        mask = pred[:, 3:4].reshape(B, 1, H, W)
        ret = {'rgb': rgb, 'mask': mask}
        scalar_stats = {'loss': loss}
        image_stats = {}
        return ret, loss, scalar_stats, image_stats


if __name__ == "__main__":
    B, H, W = 2, 32, 32
    C_IN, T = 16, 64          # C_in multiple of 16 -> dense bf16 sublane packing

    key = jax.random.PRNGKey(0)
    k_uv, k_img, k_msk, k_tex, k_w = jax.random.split(key, 5)

    batch = {
        'uv': jax.random.uniform(k_uv, (B, 2, H, W), jnp.float32),
        'img': jax.random.uniform(k_img, (B, 3, H, W), jnp.float32),
        'msk': (jax.random.uniform(k_msk, (B, H, W), jnp.float32) > 0.3).astype(jnp.float32),
    }

    tex = 0.1 * jax.random.normal(k_tex, (T, T, C_IN), jnp.float32)
    w = jax.random.normal(k_w, (C_IN, 4), jnp.float32) / jnp.sqrt(jnp.float32(C_IN))
    b = jnp.zeros((1, 4), jnp.float32)

    # small tm_max so the toy shapes exercise a multi-tile, two-axis parallel grid
    model = NetworkWrapperPallas(tex, w, b, tm_max=512)
    ret, loss, scalar_stats, image_stats = model(batch)
    jax.block_until_ready((ret, loss, scalar_stats))

    # pure-JAX reference using the same bf16 texture/weight/target quantization as the kernel
    def reference(batch, tex, w, b):
        uv = batch['uv']
        img = batch['img'].astype(jnp.float32)
        msk = batch['msk'].astype(jnp.float32)
        Tt = tex.shape[0]
        uu = jnp.clip(jnp.round(uv[:, 0] * (Tt - 1)).astype(jnp.int32), 0, Tt - 1)
        vv = jnp.clip(jnp.round(uv[:, 1] * (Tt - 1)).astype(jnp.int32), 0, Tt - 1)
        feat = tex[vv, uu].astype(jnp.bfloat16)                                  # (B,H,W,C)
        y = jax.nn.sigmoid(
            jnp.dot(feat, w.astype(jnp.bfloat16),
                    preferred_element_type=jnp.float32) + b.reshape(1, 1, 1, 4))
        rgb = jnp.transpose(y[..., 0:3], (0, 3, 1, 2))
        maskp = jnp.transpose(y[..., 3:4], (0, 3, 1, 2))
        img_q = img.astype(jnp.bfloat16).astype(jnp.float32)                     # kernel streams bf16
        m = msk.astype(jnp.bfloat16).astype(jnp.float32)[:, None]
        x = jnp.concatenate([rgb * m, maskp], axis=1)
        tgt = jnp.concatenate([img_q * m, m], axis=1)
        return rgb, maskp, jnp.mean(jnp.abs(x - tgt)) + jnp.mean((x - tgt) ** 2)

    ref_rgb, ref_mask, ref_loss = reference(batch, tex, w, b)

    assert ret['rgb'].shape == (B, 3, H, W)
    assert ret['mask'].shape == (B, 1, H, W)
    assert bool(jnp.isfinite(loss))
    # pred outputs are bf16 (I/O bandwidth); loss itself is computed in f32 in-kernel
    assert jnp.max(jnp.abs(ret['rgb'].astype(jnp.float32) - ref_rgb)) < 1e-2
    assert jnp.max(jnp.abs(ret['mask'].astype(jnp.float32) - ref_mask)) < 1e-2
    assert jnp.abs(loss - ref_loss) < 2e-3
    print("KERNEL_OK")
</pallas_src>

<mosaic_0001>
module attributes {stable_mosaic.version = 11 : i64} {
  func.func @_render_loss_kernel(%arg0: i32, %arg1: i32, %arg2: memref<16x512xbf16, #tpu.memory_space<vmem>>, %arg3: memref<4x16xbf16, #tpu.memory_space<vmem>>, %arg4: memref<4x1xf32, #tpu.memory_space<vmem>>, %arg5: memref<1x3x512xbf16, #tpu.memory_space<vmem>>, %arg6: memref<1x1x512xbf16, #tpu.memory_space<vmem>>, %arg7: memref<1x4x512xbf16, #tpu.memory_space<vmem>>, %arg8: memref<1x1x1xf32, #tpu.memory_space<vmem>>, %arg9: memref<1x1x1xf32, #tpu.memory_space<vmem>>) attributes {dimension_semantics = [#tpu.dimension_semantics<parallel>, #tpu.dimension_semantics<parallel>], iteration_bounds = array<i64: 2, 2>, scalar_prefetch = 0 : i64, scratch_operands = 0 : i64, tpu.core_type = #tpu.core_type<tc>, window_params = [{transform_indices = @transform_0, window_bounds = array<i64: 16, 512>}, {pipeline_mode = #tpu.pipeline_mode<synchronous>, transform_indices = @transform_1, window_bounds = array<i64: 4, 16>}, {pipeline_mode = #tpu.pipeline_mode<synchronous>, transform_indices = @transform_2, window_bounds = array<i64: 4, 1>}, {transform_indices = @transform_3, window_bounds = array<i64: 1, 3, 512>}, {transform_indices = @transform_4, window_bounds = array<i64: 1, 1, 512>}, {transform_indices = @transform_5, window_bounds = array<i64: 1, 4, 512>}, {transform_indices = @transform_6, window_bounds = array<i64: 1, 1, 1>}, {transform_indices = @transform_7, window_bounds = array<i64: 1, 1, 1>}]} {
    %c0 = arith.constant 0 : index
    %c0_0 = arith.constant 0 : index
    %0 = vector.load %arg3[%c0, %c0_0] : memref<4x16xbf16, #tpu.memory_space<vmem>>, vector<4x16xbf16>
    %c0_1 = arith.constant 0 : index
    %c0_2 = arith.constant 0 : index
    %1 = vector.load %arg2[%c0_1, %c0_2] : memref<16x512xbf16, #tpu.memory_space<vmem>>, vector<16x512xbf16>
    %cst = arith.constant dense<0.000000e+00> : vector<4x512xf32>
    %2 = tpu.matmul %0, %1, %cst {dimension_numbers = #tpu.dot_dimension_numbers<[1], [0], [0], [1], [0, 0, 1, 1], [], []>} : vector<4x16xbf16>, vector<16x512xbf16>, vector<4x512xf32> -> vector<4x512xf32>
    %c0_3 = arith.constant 0 : index
    %c0_4 = arith.constant 0 : index
    %3 = vector.load %arg4[%c0_3, %c0_4] : memref<4x1xf32, #tpu.memory_space<vmem>>, vector<4x1xf32>
    %4 = vector.broadcast %3 : vector<4x1xf32> to vector<4x512xf32>
    %5 = arith.addf %2, %4 : vector<4x512xf32>
    %cst_5 = arith.constant 5.000000e-01 : f32
    %6 = vector.broadcast %cst_5 : f32 to vector<4x512xf32>
    %7 = arith.mulf %6, %5 : vector<4x512xf32>
    %8 = math.tanh %7 : vector<4x512xf32>
    %cst_6 = arith.constant 5.000000e-01 : f32
    %9 = vector.broadcast %cst_6 : f32 to vector<4x512xf32>
    %10 = arith.mulf %9, %8 : vector<4x512xf32>
    %cst_7 = arith.constant 5.000000e-01 : f32
    %11 = vector.broadcast %cst_7 : f32 to vector<4x512xf32>
    %12 = arith.addf %10, %11 : vector<4x512xf32>
    %13 = arith.truncf %12 : vector<4x512xf32> to vector<4x512xbf16>
    %c0_8 = arith.constant 0 : index
    %c0_9 = arith.constant 0 : index
    %c0_10 = arith.constant 0 : index
    %14 = vector.load %arg7[%c0_8, %c0_9, %c0_10] : memref<1x4x512xbf16, #tpu.memory_space<vmem>>, vector<1x4x512xbf16>
    %15 = vector.shape_cast %14 : vector<1x4x512xbf16> to vector<4x512xbf16>
    %16 = vector.shape_cast %13 : vector<4x512xbf16> to vector<1x4x512xbf16>
    tpu.vector_store %arg7[%c0_8, %c0_9, %c0_10], %16 {strides = array<i32>} : memref<1x4x512xbf16, #tpu.memory_space<vmem>>, vector<1x4x512xbf16>,
    %c0_11 = arith.constant 0 : index
    %c0_12 = arith.constant 0 : index
    %c0_13 = arith.constant 0 : index
    %17 = vector.load %arg5[%c0_11, %c0_12, %c0_13] : memref<1x3x512xbf16, #tpu.memory_space<vmem>>, vector<1x3x512xbf16>
    %18 = vector.shape_cast %17 : vector<1x3x512xbf16> to vector<3x512xbf16>
    %19 = arith.extf %18 : vector<3x512xbf16> to vector<3x512xf32>
    %c0_14 = arith.constant 0 : index
    %c0_15 = arith.constant 0 : index
    %c0_16 = arith.constant 0 : index
    %20 = vector.load %arg6[%c0_14, %c0_15, %c0_16] : memref<1x1x512xbf16, #tpu.memory_space<vmem>>, vector<1x1x512xbf16>
    %21 = vector.shape_cast %20 : vector<1x1x512xbf16> to vector<1x512xbf16>
    %22 = arith.extf %21 : vector<1x512xbf16> to vector<1x512xf32>
    %23 = tpu.concatenate %19, %22 in 0 : vector<3x512xf32>, vector<1x512xf32> -> vector<4x512xf32>
    %24 = tpu.iota {dimensions = array<i32: 0>} : vector<4x1xi32>
    %c3_i32 = arith.constant 3 : i32
    %25 = vector.broadcast %c3_i32 : i32 to vector<4x1xi32>
    %26 = arith.cmpi slt, %24, %25 : vector<4x1xi32>
    %cst_17 = arith.constant 1.000000e+00 : f32
    %27 = vector.shape_cast %26 : vector<4x1xi1> to vector<4x1xi1>
    %28 = vector.broadcast %27 : vector<4x1xi1> to vector<4x512xi1>
    %29 = vector.shape_cast %22 : vector<1x512xf32> to vector<1x512xf32>
    %30 = vector.broadcast %29 : vector<1x512xf32> to vector<4x512xf32>
    %31 = vector.broadcast %cst_17 : f32 to vector<4x512xf32>
    %32 = arith.select %28, %30, %31 : vector<4x512xi1>, vector<4x512xf32>
    %33 = arith.subf %12, %23 : vector<4x512xf32>
    %34 = arith.mulf %33, %32 : vector<4x512xf32>
    %35 = math.absf %34 : vector<4x512xf32>
    %36 = vector.shape_cast %35 : vector<4x512xf32> to vector<1x4x512xf32>
    %cst_18 = arith.constant dense<0.000000e+00> : vector<1xf32>
    %37 = vector.multi_reduction <add>, %36, %cst_18 [1, 2] : vector<1x4x512xf32> to vector<1xf32>
    %38 = vector.shape_cast %37 : vector<1xf32> to vector<1x1x1xf32>
    %39 = vector.extract %38[0, 0, 0] : f32 from vector<1x1x1xf32>
    %40 = vector.broadcast %39 : f32 to vector<1x1x1xf32>
    %c0_19 = arith.constant 0 : index
    %c0_20 = arith.constant 0 : index
    %c0_21 = arith.constant 0 : index
    %41 = vector.load %arg8[%c0_19, %c0_20, %c0_21] : memref<1x1x1xf32, #tpu.memory_space<vmem>>, vector<1x1x1xf32>
    tpu.vector_store %arg8[%c0_19, %c0_20, %c0_21], %40 {strides = array<i32>} : memref<1x1x1xf32, #tpu.memory_space<vmem>>, vector<1x1x1xf32>,
    %42 = arith.mulf %34, %34 : vector<4x512xf32>
    %43 = vector.shape_cast %42 : vector<4x512xf32> to vector<1x4x512xf32>
    %cst_22 = arith.constant dense<0.000000e+00> : vector<1xf32>
    %44 = vector.multi_reduction <add>, %43, %cst_22 [1, 2] : vector<1x4x512xf32> to vector<1xf32>
    %45 = vector.shape_cast %44 : vector<1xf32> to vector<1x1x1xf32>
    %46 = vector.extract %45[0, 0, 0] : f32 from vector<1x1x1xf32>
    %47 = vector.broadcast %46 : f32 to vector<1x1x1xf32>
    %c0_23 = arith.constant 0 : index
    %c0_24 = arith.constant 0 : index
    %c0_25 = arith.constant 0 : index
    %48 = vector.load %arg9[%c0_23, %c0_24, %c0_25] : memref<1x1x1xf32, #tpu.memory_space<vmem>>, vector<1x1x1xf32>
    tpu.vector_store %arg9[%c0_23, %c0_24, %c0_25], %47 {strides = array<i32>} : memref<1x1x1xf32, #tpu.memory_space<vmem>>, vector<1x1x1xf32>,
    return
  }
  func.func @transform_0(%arg0: i32, %arg1: i32) -> (i32, i32) {
    %c2_i32 = arith.constant 2 : i32
    %0 = arith.muli %arg0, %c2_i32 : i32
    %1 = arith.addi %0, %arg1 : i32
    %c0_i32 = arith.constant 0 : i32
    %c0_i32_0 = arith.constant 0 : i32
    return %c0_i32, %1 : i32, i32
  }
  func.func @transform_1(%arg0: i32, %arg1: i32) -> (i32, i32) {
    %c0_i32 = arith.constant 0 : i32
    %c0_i32_0 = arith.constant 0 : i32
    %c0_i32_1 = arith.constant 0 : i32
    return %c0_i32, %c0_i32_0 : i32, i32
  }
  func.func @transform_2(%arg0: i32, %arg1: i32) -> (i32, i32) {
    %c0_i32 = arith.constant 0 : i32
    %c0_i32_0 = arith.constant 0 : i32
    %c0_i32_1 = arith.constant 0 : i32
    return %c0_i32, %c0_i32_0 : i32, i32
  }
  func.func @transform_3(%arg0: i32, %arg1: i32) -> (i32, i32, i32) {
    %c0_i32 = arith.constant 0 : i32
    %c0_i32_0 = arith.constant 0 : i32
    return %arg0, %c0_i32, %arg1 : i32, i32, i32
  }
  func.func @transform_4(%arg0: i32, %arg1: i32) -> (i32, i32, i32) {
    %c0_i32 = arith.constant 0 : i32
    %c0_i32_0 = arith.constant 0 : i32
    return %arg0, %c0_i32, %arg1 : i32, i32, i32
  }
  func.func @transform_5(%arg0: i32, %arg1: i32) -> (i32, i32, i32) {
    %c0_i32 = arith.constant 0 : i32
    %c0_i32_0 = arith.constant 0 : i32
    return %arg0, %c0_i32, %arg1 : i32, i32, i32
  }
  func.func @transform_6(%arg0: i32, %arg1: i32) -> (i32, i32, i32) {
    %c2_i32 = arith.constant 2 : i32
    %0 = arith.muli %arg0, %c2_i32 : i32
    %1 = arith.addi %0, %arg1 : i32
    %c0_i32 = arith.constant 0 : i32
    %c0_i32_0 = arith.constant 0 : i32
    %c0_i32_1 = arith.constant 0 : i32
    return %1, %c0_i32, %c0_i32_0 : i32, i32, i32
  }
  func.func @transform_7(%arg0: i32, %arg1: i32) -> (i32, i32, i32) {
    %c2_i32 = arith.constant 2 : i32
    %0 = arith.muli %arg0, %c2_i32 : i32
    %1 = arith.addi %0, %arg1 : i32
    %c0_i32 = arith.constant 0 : i32
    %c0_i32_0 = arith.constant 0 : i32
    %c0_i32_1 = arith.constant 0 : i32
    return %1, %c0_i32, %c0_i32_0 : i32, i32, i32
  }
}

</mosaic_0001>

<bundles_post_ra>
// kernel: tpu_custom_call.1
= control target key start
LH: loop header
LB: loop body
LE: loop exit
PB: predicated region body
PF: predicated region fallthrough
CT: control target
= control target key end

     0   :  { %s1556_s0 = inlined_call_operand.hbm [shape: bf16[16,2048], index: 0, kind: input, shape index: {}]   ;;  %s1557_s1 = inlined_call_operand.vmem [shape: bf16[4,16], index: 1, kind: input, shape index: {}]   ;;  %s1558_s2 = inlined_call_operand.vmem [shape: f32[4,1], index: 2, kind: input, shape index: {}]   ;;  %s1559_s3 = inlined_call_operand.vmem [shape: bf16[2,3,1024], index: 3, kind: input, shape index: {}]   ;;  %s1560_s4 = inlined_call_operand.vmem [shape: bf16[2,1,1024], index: 4, kind: input, shape index: {}]   ;;  %s1561_s5 = inlined_call_operand.hbm [shape: bf16[2,4,1024], index: 5, kind: output, shape index: {0}]   ;;  %s1562_s6 = inlined_call_operand.vmem [shape: f32[4,1,1], index: 6, kind: output, shape index: {1}]   ;;  %s1563_s7 = inlined_call_operand.vmem [shape: f32[4,1,1], index: 7, kind: output, shape index: {2}]  }
   0x1   :  { %1569 = sst [smem:[#allocation10_spill]] %s1556_s0 }
   0x2   :  { %1570 = sst [smem:[#allocation11_spill]] %s1557_s1 }
   0x3   :  { %1571 = sst [smem:[#allocation12_spill]] %s1558_s2 }
   0x4   :  { %1572 = sst [smem:[#allocation13_spill]] %s1559_s3 }
   0x5   :  { %1573 = sst [smem:[#allocation14_spill]] %s1561_s5 }
   0x6   :  { %1574 = sst [smem:[#allocation15_spill]] %s1562_s6 }
   0x7   :  { %1575 = sst [smem:[#allocation16_spill]] %s1563_s7 }
   0x8   :  { %13 = vsyncpa [#allocation3], 0 }
   0x9   :  { %15 = vsyncpa [#allocation3 + $0x1], 0 }
   0xa   :  { %16 = vsyncpa [#allocation4], 0 }
   0xb   :  { %18 = vsyncpa [#allocation4 + $0x1], 0  ;;  %s1268_s24 = smov 0   ;;  %s1270_s25 = smov 0  }
   0xc   :  { %s1272_s26 = smov 0   ;;  %s1274_s27 = smov 0  }
   0xd   :  { %s1276_s28 = smov 0   ;;  %s1278_s29 = smov 0  }
   0xe   :  { %s1280_s30 = smov 0   ;;  %s1282_s8 = smov 0  }
   0xf   :  { %s1284_s9 = smov 0   ;;  %s1286_s10 = smov 0  }
  0x10   :  { %s1288_s11 = smov 0  }
  0x11 LB: > { %1576 = sst [smem:[#allocation8_spill]] %s1211_s9  ;;  %s1564_s12 = sadd.s32 4294967295, %s1219_s11   ;;  %s1219_s11 = sphi %s1288_s11, %s24_s11   ;;  %s1215_s10 = sphi %s1286_s10, %s1605_s10   ;;  %s1211_s9 = sphi %s1284_s9, %s1604_s9   ;;  %s1207_s8 = sphi %s1282_s8, %s1603_s8   ;;  %s1203_s30 = sphi %s1280_s30, %s1595_s30   ;;  %s1199_s29 = sphi %s1278_s29, %s1602_s29   ;;  %s1195_s28 = sphi %s1276_s28, %s1601_s28   ;;  %s1191_s27 = sphi %s1274_s27, %s1600_s27   ;;  %s1187_s26 = sphi %s1272_s26, %s1599_s26   ;;  %s1183_s25 = sphi %s1270_s25, %s1598_s25   ;;  %s1179_s24 = sphi %s1268_s24, %s1597_s24  }
  0x12   : > { %s33_s14 = sadd.s32 1, %s1211_s9  ;;  %s36_s15 = sadd.s32 1, %s1215_s10 }
  0x13   : > { %p34_p0 = scmp.ge.s32.totalorder %s33_s14, 2  ;;  %s904_s16 = sshll.u32 %s1215_s10, 1 }
  0x14   : > { %s1327_s17 = sadd.s32 %s1211_s9, %s904_s16  ;;  %s47_s18 = sadd.s32 1, %s1199_s29 }
  0x15   : > { %s1607_s14 = smov (%p34_p0, %s33_s14), 0  ;;  %s1609_s15 = smov (!%p34_p0, %s36_s15), %s1215_s10 }
  0x16   : > { %p54_p1 = scmp.ne.s32.totalorder %s1199_s29, %s1195_s28  ;;  %p55_p2 = scmp.eq.s32.totalorder %s1219_s11, 0 }
  0x17   : > { %p38_p3 = scmp.ge.s32.totalorder %s1609_s15, 2  ;;  %p60_p4 = scmp.ne.s32.totalorder %s1195_s28, %s1191_s27 }
  0x18   : > { %p1337_p5 = por %p55_p2, %p54_p1  ;;  %p61_p6 = scmp.eq.s32.totalorder %s1564_s12, 0 }
  0x19   : > { %s1611_s15 = smov (%p38_p3, %s1609_s15), 0  ;;  %s169_s21 = ssub.s32 %s1211_s9, %s1607_s14 }
  0x1a   : > { %1578 = sst [smem:[#allocation9_spill]] %s1611_s15  ;;  %p1345_p7 = por %p61_p6, %p60_p4 }
  0x1b   : > { %s905_s22 = sshll.u32 %s1611_s15, 1  ;;  %s168_s23 = ssub.s32 %s1215_s10, %s1611_s15 }
  0x1c   : > { %s43_s27 = sadd.s32 %s905_s22, %s1607_s14  ;;  %s170_s16 = sor.u32 %s169_s21, %s168_s23 }
  0x1d   : > { %s44_s13 = ssub.s32 %s1327_s17, %s43_s27  ;;  %p171_p8 = scmp.eq.s32.totalorder %s170_s16, 0 }
  0x1e   : > { %p45_p9 = scmp.eq.s32.totalorder %s44_s13, 0  ;;  %s173_s12 = sadd.s32 1, %s1187_s26 }
  0x1f   : > { %s1358_s7 = scalar_select %p171_p8, %s1187_s26, %s173_s12  }
  0x20   : > { %s1361_s6 = scalar_select %p45_p9, %s1199_s29, %s47_s18  }
  0x21   : > { %p183_p10 = scmp.ne.s32.totalorder %s1187_s26, %s1183_s25  ;;  %s1580_s5 = sadd.s32 4294967295, %s1219_s11  }
  0x22   : > { %p184_p11 = scmp.eq.s32.totalorder %s1580_s5, 3  ;;  %p189_p12 = scmp.ne.s32.totalorder %s1183_s25, %s1179_s24 }
  0x23   : > { %s1581_s9 = sadd.s32 4294967294, %s1219_s11   ;;  %p957_p2 = scmp.lt.s32.totalorder %s1219_s11, 4 }
  0x24   : > { %p190_p13 = scmp.eq.s32.totalorder %s1581_s9, 3  ;;  %p1371_p0 = por %p184_p11, %p183_p10 }
  0x25   : > { %s276_s12 = sand.u32 1, %s1199_s29   ;;  %s940_s13 = sshll.u32 %s1327_s17, 8 }
  0x26   : > { %s1582_s22 = scalar_select %p1371_p0, 1, 0 }
  0x27   : > { %p1375_p1 = por %p190_p13, %p189_p12  ;;  %s912_s18 = sshll.u32 %s276_s12, 5 }
  0x28   : > { %s1584_s0 = sld [smem:[#allocation10_spill]]  ;;  %s280_s5 = scalar_lea.vmem [#allocation2], %s912_s18 }
  0x29   : > { %s1583_s21 = scalar_select %p1375_p1, 1, 0 }
  0x2a   : > { %s289_s9 = sshll.u32 %s280_s5, 4  ;;  %p1389_p3 = pnand %p957_p2, %p1337_p5  ;;  %s1393_s9 = int_to_ptr.vmem [resolvable:$true] %s289_s9 }
  0x2b   : > { %s1396_s17 = scalar_lea.sflag [#allocation3], %s276_s12 }
  0x2c   : > { %p1069_p8 = pneg %p1389_p3 }
  0x2e   : > { %s1385_s16 = scalar_lea.hbm %s1584_s0, %s940_s13  ;;  %s1072_s23 = scalar_lea.hbm %s1584_s0, 2048 }
  0x2f   : > { %s1067_s13 = scalar_lea.hbm %s1385_s16, 512  ;;  %p1073_p5 = scmp.lt.u32.totalorder %s1385_s16, %s1584_s0 }
  0x30   : > { %p1068_p6 = scmp.ne.s32.totalorder %s1385_s16, %s1067_s13  ;;  %p1074_p11 = scmp.lt.u32.totalorder %s1072_s23, %s1067_s13 }
  0x31   : > { %p1076_p13 = scmp.lt.u32.totalorder %s1067_s13, %s1385_s16 }
  0x32   : > { %p1070_p9 = pnand %p1069_p8, %p1068_p6  ;;  %p1075_p12 = por %p1074_p11, %p1073_p5 }
  0x34   : > { %p1071_p10 = pneg %p1070_p9  ;;  %p1077_p2 = por %p1076_p13, %p1075_p12 }
  0x36   : > { %p1078_p4 = pnand %p1077_p2, %p1071_p10 }
  0x38   : > { %1081 = shalt.err (!%p1078_p4)
}
  0x39   : > { %s1082_s12 = scalar_lea.vmem %s1393_s9, 512  ;;  %s1221_s19 = smov [#allocation2]  }
  0x3a   : > { %p1083_p6 = scmp.ne.s32.totalorder %s1393_s9, %s1082_s12  ;;  %s1087_s18 = sshll.u32 %s1221_s19, 4  ;;  %s1088_s18 = int_to_ptr.vmem [resolvable:$false] %s1087_s18 }
  0x3b   : > { %s1089_s27 = scalar_lea.vmem %s1088_s18, 1024  ;;  %p1090_p0 = scmp.lt.s32.totalorder %s1393_s9, %s1088_s18 }
  0x3c   : > { %p1085_p9 = pnand %p1083_p6, %p1069_p8  ;;  %p1091_p5 = scmp.lt.s32.totalorder %s1089_s27, %s1082_s12 }
  0x3e   : > { %p1086_p1 = pneg %p1085_p9  ;;  %p1092_p11 = por %p1091_p5, %p1090_p0 }
  0x40   : > { %p1093_p12 = pnand %p1092_p11, %p1086_p1 }
  0x42   : > { %1096 = shalt.err (!%p1093_p12)
}
  0x43   : > { %s1222_s13 = smov 1024   ;;  %s1223_s23 = smov 256  }
  0x44   : > { %s1224_s5 = smov 16   ;;  %p322_p4 = scmp.lt.s32.totalorder %s1219_s11, 5 }
  0x45   : > { %952 = dma.hbm_to_vmem [thread:$0]  (!%p1389_p3), %s1385_s16, 512, %s1393_s9, %s1396_s17, %s1222_s13, %s1223_s23, %s1224_s5  }
  0x46   : > { %p1586_p8 = scmp.ge.s32.totalorder %s1219_s11, 1 }
  0x48   : > { %p323_p10 = pnand %p1586_p8, %p322_p4 }
  0x49   : > { %s328_s12 = sand.u32 (!%p323_p10), 1, %s1195_s28  }
  0x4a   : > { %326 = sbr.rel (%p323_p10) target bundleno = 544 (0x220), region = 40  ;;  %s917_s19 = sshll.u32 (!%p323_p10), %s328_s12, 5 }
  0x4b   : > { %s329_s18 = scalar_lea.sflag (!%p323_p10), [#allocation3], %s328_s12  ;;  %s332_s27 = scalar_lea.vmem (!%p323_p10), [#allocation2], %s917_s19 }
  0x51   : > { %1170 = dma.done.wait (%p1345_p7), %s329_s18, 512  }
  0x52   : > { %1172 = vsyncadd (%p1345_p7), %s329_s18, 4294966784  ;;  %v1225_v0 = vmov 0   ;;  %v1053_v1 = vld [vmem:[%s332_s27 + $0x4] ss:$16 sps:$4 sm:$0xff]   ;;  %v1055_v2 = vld [vmem:[%s332_s27 + $0xc] ss:$16 sps:$4 sm:$0xff]   ;;  %v574_v8 = vlaneseq }
  0x53   : > { %495 = vmatprep.mubr.bf16.mxu0 %v1225_v0  ;;  %536 = vmatprep.mubr.bf16.mxu1 %v1225_v0  ;;  %v1057_v3 = vld [vmem:[%s332_s27] ss:$16 sps:$4 sm:$0xff]   ;;  %v1058_v4 = vld [vmem:[%s332_s27 + $0x8] ss:$16 sps:$4 sm:$0xff]   ;;  %s1587_s2 = sld [smem:[#allocation12_spill]]  ;;  %s1588_s1 = sld [smem:[#allocation11_spill]] }
  0x54   : > { %1052 = vset.pattern.permute.xlu0 %v1225_v0  ;;  %463 = vmatprep.subr.bf16.mxu0 %v1053_v1  ;;  %vm459_vm0 = vcmask 130048   ;;  %s1439_s17 = sshll.u32 %s1203_s30, 2  ;;  %p394_p7 = scmp.lt.s32.totalorder %s1207_s8, 1  ;;  %v1448_v15 = vshrl.u32 %v574_v8, 7  ;;  %v1226_v35 = vmov 1983009808  }
  0x55   : > { %504 = vmatprep.subr.bf16.mxu1 %v1055_v2  ;;  %464 = vmatpush1.bf16.msra.mxu0 %v1057_v3  ;;  %p396_p0 = scmp.lt.s32.totalorder %s1439_s17, 7  ;;  %s1589_s3 = sld [smem:[#allocation13_spill]]  ;;  %v572_v36 = vunpack.c.l.s4 %v1226_v35  ;;  %vm620_vm1 = vcmask 1042432   ;;  %vm662_vm3 = vcmask 1043456  }
  0x56   : > { %505 = vmatpush1.bf16.msra.mxu1 %v1058_v4  ;;  %s395_s13 = scalar_select %p394_p7, %s1207_s8, 1  ;;  %v602_v28 = vsub.s32 0, %v1448_v15  ;;  %v610_v30 = vsub.s32 4, %v1448_v15  ;;  %v606_v31 = vsub.s32 2, %v1448_v15  ;;  %v614_v33 = vsub.s32 6, %v1448_v15 }
  0x57   : > { %s397_s23 = scalar_select %p396_p0, %s1439_s17, 7  ;;  %vm627_vm2 = vcmp.lt.s32.totalorder %v1448_v15, 3  ;;  %v573_v43 = vunpack.c.0.s8 %v572_v36 }
  0x58   : > { %s920_s5 = sshll.u32 %s395_s13, 3  ;;  %s373_s13 = sand.u32 1, %s1183_s25  }
  0x59   : > { %v433_v5 = vld [vmem:[%s1587_s2] sm:$0xf]  ;;  %s399_s12 = sadd.s32 %s920_s5, %s397_s23  ;;  %v576_v60 = vsub.s32 %v573_v43, %v1448_v15  ;;  %s1474_s23 = sshll.u32 %s373_s13, 3 }
  0x5a   : > { %v428_v6 = vld [vmem:[%s1588_s1] sm:$0x3]  ;;  %436 = vperm.xlu0 %1052, %v433_v5   ;;  %s410_s27 = scalar_lea.vmem %s1560_s4, %s399_s12  ;;  %s921_s15 = sshll.u32 %s399_s12, 1 }
  0x5b   : > { %930 = vmatmul.mubr.msk.bf16.vlgmr.msra.gmra.mrb[0].mxu0 %vm459_vm0, %v428_v6  ;;  %931 = vmatmul.mubr.msk.bf16.vlgmr.msra.gmra.mrb[0].mxu1 %vm459_vm0, %v428_v6  ;;  %v591_v21 = vld [vmem:[%s410_s27] sm:$0xf]  ;;  %s401_s9 = scalar_lea.vmem %s1589_s3, %s921_s15  ;;  %s375_s5 = scalar_lea.vmem [#allocation5], %s1474_s23 }
  0x5c   : > { %v592_v27 = vunpack.c.l.bf16 %v591_v21  ;;  %v588_v29 = vld [vmem:[%s401_s9] sm:$0xff]  ;;  %s936_s12 = sshll.u32 %s1207_s8, 3  ;;  %s1590_s16 = sld [smem:[#allocation14_spill]] }
  0x5d   : > { %v589_v34 = vunpack.c.l.bf16 %v588_v29  ;;  %v590_v37 = vunpack.c.h.bf16 %v588_v29  ;;  %s727_s19 = sadd.s32 %s936_s12, %s1439_s17  ;;  %s731_s9 = sshll.u32 %s375_s5, 4  ;;  %s732_s9 = int_to_ptr.vmem [resolvable:$true] %s731_s9 }
  0x5e   : > { %v603_v32 = vrot.slane %v592_v27, %v602_v28  ;;  %v611_v38 = vrot.slane %v592_v27, %v610_v30  ;;  %v607_v39 = vrot.slane %v592_v27, %v606_v31  ;;  %v615_v41 = vrot.slane %v592_v27, %v614_v33  ;;  %s937_s18 = sshll.u32 %s727_s19, 5  ;;  %s705_s23 = scalar_lea.sflag [#allocation4], %s373_s13 }
  0x5f   : > { %v595_v44 = vcombine.high %v589_v34, %v589_v34  ;;  %v596_v47 = vcombine.high %v590_v37, %v590_v37  ;;  %s1097_s0 = scalar_lea.vmem %s732_s9, 128  ;;  %p1591_p3 = scmp.ne.s32.totalorder %s1582_s22, 0 }
  0x60   : > { %v633_v40 = vrot.slane %v603_v32, %v602_v28  ;;  %v641_v48 = vrot.slane %v611_v38, %v602_v28  ;;  %v621_v50 = vsel %vm620_vm1, %v589_v34, %v603_v32  ;;  %v623_v52 = vsel %vm620_vm1, %v590_v37, %v611_v38  ;;  %p1098_p1 = scmp.ne.s32.totalorder %s732_s9, %s1097_s0  ;;  %s1227_s1 = smov [#allocation5]  }
  0x61   : > { %v637_v53 = vrot.slane %v607_v39, %v602_v28  ;;  %v645_v58 = vrot.slane %v615_v41, %v602_v28  ;;  %v622_v61 = vsel %vm620_vm1, %v595_v44, %v607_v39  ;;  %v624_v1 = vsel %vm620_vm1, %v596_v47, %v615_v41  ;;  %s1101_s2 = sshll.u32 %s1227_s1, 4  ;;  %s1102_s2 = int_to_ptr.vmem [resolvable:$false] %s1101_s2 }
  0x62   : > { %v646_v56 = vsel %vm627_vm2, %v633_v40, 1.0  ;;  %v648_v2 = vsel %vm627_vm2, %v641_v48, 1.0  ;;  %s1490_s20 = scalar_lea.hbm %s1590_s16, %s937_s18  ;;  %p1099_p13 = pnand %p1098_p1, %p1591_p3 }
  0x63   : > { %v647_v4 = vsel %vm627_vm2, %v637_v53, 1.0  ;;  %s1103_s3 = scalar_lea.vmem %s1102_s2, 256  ;;  %p1104_p6 = scmp.lt.s32.totalorder %s732_s9, %s1102_s2 }
  0x64   : > { %p1100_p2 = pneg %p1099_p13  ;;  %p1105_p9 = scmp.lt.s32.totalorder %s1103_s3, %s1097_s0 }
  0x66   : > { %p1106_p5 = por %p1105_p9, %p1104_p6 }
  0x68   : > { %p1107_p11 = pnand %p1106_p5, %p1100_p2 }
  0xd9   : > { %v437_v7 = vpop.permute.xlu0 %436 }
 0x12e   : > { %v497_v9 = vpop.f32.mrb[0].mxu0  ;;  %v538_v10 = vpop.f32.mrb[0].mxu1 }
 0x12f   : > { %v498_v11 = vadd.f32 %v497_v9, %v437_v7  ;;  %v539_v12 = vadd.f32 %v538_v10, %v437_v7  ;;  %v499_v13 = vpop.f32.mrb[1].mxu0  ;;  %v540_v14 = vpop.f32.mrb[1].mxu1  ;;  %v649_v9 = vsel %vm627_vm2, %v645_v58, 1.0 }
 0x130   : > { %v500_v16 = vadd.f32 %v499_v13, %v437_v7  ;;  %v541_v17 = vadd.f32 %v540_v14, %v437_v7  ;;  %v501_v18 = vpop.f32.mrb[2].mxu0  ;;  %v542_v19 = vpop.f32.mrb[2].mxu1 }
 0x131   : > { %v545_v20 = vmul.f32 0.5, %v498_v11  ;;  %v547_v22 = vmul.f32 0.5, %v539_v12  ;;  %v502_v23 = vpop.f32.mrb[3].mxu0  ;;  %v543_v24 = vpop.f32.mrb[3].mxu1 }
 0x132   : > { %v546_v25 = vmul.f32 0.5, %v500_v16  ;;  %v548_v26 = vmul.f32 0.5, %v541_v17 }
 0x133   : > { %1059 = vtanh.f32 %v545_v20 }
 0x134   : > { %1061 = vtanh.f32 %v547_v22 }
 0x135   : > { %1063 = vtanh.f32 %v546_v25 }
 0x136   : > { %1065 = vtanh.f32 %v548_v26 }
 0x13d   : > { %v1060_v42 = vpop.eup %1059 }
 0x13e   : > { %v1062_v45 = vpop.eup %1061  ;;  %v553_v46 = vmul.f32 0.5, %v1060_v42 }
 0x13f   : > { %v1064_v49 = vpop.eup %1063  ;;  %v555_v51 = vmul.f32 0.5, %v1062_v45 }
 0x140   : > { %v1066_v54 = vpop.eup %1065  ;;  %v557_v55 = vadd.f32 0.5, %v553_v46  ;;  %v554_v57 = vmul.f32 0.5, %v1064_v49 }
 0x141   : > { %v559_v59 = vadd.f32 0.5, %v555_v51  ;;  %v556_v62 = vmul.f32 0.5, %v1066_v54 }
 0x142   : > { %v650_v63 = vsub.f32 %v557_v55, %v621_v50  ;;  %v558_v0 = vadd.f32 0.5, %v554_v57 }
 0x143   : > { %v652_v3 = vsub.f32 %v559_v59, %v623_v52  ;;  %v560_v5 = vadd.f32 0.5, %v556_v62 }
 0x144   : > { %v654_v6 = vmul.f32 %v650_v63, %v646_v56  ;;  %v932_v7 = vpack.c.bf16 %v558_v0, %v557_v55  ;;  %v651_v8 = vsub.f32 %v558_v0, %v622_v61 }
 0x145   : > { %v933_v10 = vpack.c.bf16 %v560_v5, %v559_v59  ;;  %v653_v11 = vsub.f32 %v560_v5, %v624_v1  ;;  %v656_v12 = vmul.f32 %v652_v3, %v648_v2 }
 0x146   : > { %v577_v13 = vrot.slane %v932_v7, %v576_v60  ;;  %v655_v14 = vmul.f32 %v651_v8, %v647_v4  ;;  %v682_v16 = vmul.f32 %v654_v6, %v654_v6  ;;  %v658_v17 = vand.u32 2147483647, %v654_v6 }
 0x147   : > { %v584_v18 = vrot.slane %v933_v10, %v576_v60  ;;  %v657_v19 = vmul.f32 %v653_v11, %v649_v9  ;;  %v684_v20 = vmul.f32 %v656_v12, %v656_v12  ;;  %v660_v21 = vand.u32 2147483647, %v656_v12 }
 0x148   : > { %v683_v22 = vmul.f32 %v655_v14, %v655_v14  ;;  %v686_v15 = vsel %vm662_vm3, %v682_v16, 0.0  ;;  %v659_v23 = vand.u32 2147483647, %v655_v14  ;;  %v663_v24 = vsel %vm662_vm3, %v658_v17, 0.0 }
 0x149   : > { %v685_v25 = vmul.f32 %v657_v19, %v657_v19  ;;  %v661_v27 = vand.u32 2147483647, %v657_v19  ;;  %v585_v29 = vcombine.low %v577_v13, %v584_v18  ;;  %v689_v32 = vsel %vm662_vm3, %v684_v20, 0.0 }
 0x14a   : > { %v687_v26 = vsel %vm662_vm3, %v683_v22, 0.0  ;;  %v664_v28 = vsel %vm662_vm3, %v659_v23, 0.0  ;;  %v666_v33 = vsel %vm662_vm3, %v660_v21, 0.0 }
 0x14b   : > { %v688_v30 = vadd.f32 %v687_v26, %v686_v15  ;;  %v665_v31 = vadd.f32 %v664_v28, %v663_v24  ;;  %587 = vst [vmem:[%s375_s5] sm:$0xff] %v585_v29  ;;  %v691_v36 = vsel %vm662_vm3, %v685_v25, 0.0  ;;  %v668_v37 = vsel %vm662_vm3, %v661_v27, 0.0 }
 0x14d   : > { %v690_v34 = vadd.f32 %v689_v32, %v688_v30  ;;  %v667_v35 = vadd.f32 %v666_v33, %v665_v31 }
 0x14f   : > { %v692_v38 = vadd.f32 %v691_v36, %v690_v34  ;;  %v669_v39 = vadd.f32 %v668_v37, %v667_v35 }
 0x151   : > { %693 = vadd.xlane.f32.xlu1 %v692_v38  ;;  %670 = vadd.xlane.f32.xlu0 %v669_v39 }
 0x152   : > { %1110 = shalt.err (!%p1107_p11)
}
 0x153   : > { %s1111_s17 = scalar_lea.hbm %s1490_s20, 128  ;;  %s1115_s1 = scalar_lea.hbm %s1590_s16, 512 }
 0x154   : > { %p1112_p12 = scmp.ne.s32.totalorder %s1490_s20, %s1111_s17  ;;  %p1116_p10 = scmp.lt.u32.totalorder %s1490_s20, %s1590_s16 }
 0x155   : > { %p1117_p7 = scmp.lt.u32.totalorder %s1115_s1, %s1111_s17  ;;  %p1119_p1 = scmp.lt.u32.totalorder %s1111_s17, %s1490_s20 }
 0x156   : > { %p1113_p4 = pnand %p1112_p12, %p1591_p3 }
 0x157   : > { %p1118_p0 = por %p1117_p7, %p1116_p10 }
 0x158   : > { %p1114_p8 = pneg %p1113_p4 }
 0x159   : > { %p1120_p13 = por %p1119_p1, %p1118_p0 }
 0x15b   : > { %p1121_p2 = pnand %p1120_p13, %p1114_p8 }
 0x15d   : > { %1124 = shalt.err (!%p1121_p2)
}
 0x15e   : > { %947 = dma.vmem_to_hbm [thread:$0]  (%p1591_p3), %s732_s9, 128, %s1490_s20, %s705_s23   ;;  %vm680_vm4 = vcmask 0  }
 0x15f   : > { %s924_s0 = sshll.u32 %s1207_s8, 1  ;;  %s1592_s18 = sld [smem:[#allocation15_spill]] }
 0x160   : > { %s414_s3 = sadd.s32 %s1203_s30, %s924_s0  ;;  %s1593_s23 = sld [smem:[#allocation16_spill]] }
 0x161   : > { %p415_p3 = scmp.lt.s32.totalorder %s414_s3, 3 }
 0x163   : > { %s1613_s3 = smov (!%p415_p3, %s414_s3), 3 }
 0x165   : > { %s417_s27 = scalar_lea.vmem %s1592_s18, %s1613_s3 }
 0x166   : > { %s424_s17 = scalar_lea.vmem %s1593_s23, %s1613_s3 }
 0x1de   : > { %v694_v40 = vpop.xlane.xlu1 %693  ;;  %v671_v41 = vpop.xlane.xlu0 %670 }
 0x1df   : > { %v695_v42 = vrot.slane %v694_v40, 4  ;;  %v672_v43 = vrot.slane %v671_v41, 4 }
 0x1e1   : > { %v696_v44 = vadd.f32 %v695_v42, %v694_v40  ;;  %v673_v45 = vadd.f32 %v672_v43, %v671_v41 }
 0x1e3   : > { %v697_v46 = vrot.slane %v696_v44, 2  ;;  %v674_v47 = vrot.slane %v673_v45, 2 }
 0x1e5   : > { %v698_v48 = vadd.f32 %v697_v46, %v696_v44  ;;  %v675_v49 = vadd.f32 %v674_v47, %v673_v45 }
 0x1e7   : > { %v676_v50 = vrot.slane %v675_v49, 1  ;;  %v699_v51 = vrot.slane %v698_v48, 1 }
 0x1e9   : > { %v677_v52 = vadd.f32 %v676_v50, %v675_v49  ;;  %v700_v53 = vadd.f32 %v699_v51, %v698_v48 }
 0x1eb   : > { %941 = vpush %v677_v52 }
 0x1ec   : > { %943 = vpush %v700_v53 }
 0x21c   : > { %s942_s15 = spop %941 }
 0x21d   : > { %v679_v54 = vstv %s942_s15  ;;  %s944_s13 = spop %943 }
 0x21e   : > { %681 = vst.msk [vmem:[%s417_s27] sm:$0x1] %vm680_vm4, %v679_v54  ;;  %v702_v55 = vstv %s944_s13 }
 0x21f   : > { %703 = vst.msk [vmem:[%s424_s17] sm:$0x1] %vm680_vm4, %v702_v55 }
 0x220 PF: > { %p958_p6 = scmp.ge.s32.totalorder %s1219_s11, 2  ;;  %s753_s30 = sand.u32 1, %s1179_s24  }
 0x221   : > { %p1594_p9 = scmp.ne.s32.totalorder %s1583_s21, 0  ;;  %s754_s8 = scalar_lea.sflag [#allocation4], %s753_s30 }
 0x223   : > { %p954_p5 = pnand %p958_p6, %p1594_p9 }
 0x225   : > { %1174 = dma.done.wait (!%p954_p5), %s754_s8, 128  }
 0x226   : > { %1176 = vsyncadd (!%p954_p5), %s754_s8, 4294967168  ;;  %s24_s11 = sadd.s32 1, %s1219_s11   ;;  %s1595_s30 = sld [smem:[#allocation8_spill]] }
 0x227   : > { %p21_p11 = scmp.ge.s32.totalorder %s24_s11, 6   ;;  %s1596_s5 = sld [smem:[#allocation9_spill]] }
 0x228   : > { %s1597_s24 = smov %s1183_s25  ;;  %s1598_s25 = smov %s1187_s26 }
 0x229   : > { %s1599_s26 = smov %s1358_s7  ;;  %s1600_s27 = smov %s1195_s28 }
 0x22a   : > { %s1601_s28 = smov %s1199_s29  ;;  %s1602_s29 = smov %s1361_s6 }
 0x22b   : > { %s1603_s8 = smov %s1215_s10  ;;  %s1604_s9 = smov %s1607_s14 }
 0x22c   :  { %23 = sbr.rel (!%p21_p11) target bundleno = 17 (0x11), region = 115 }
 0x22d   : > { %s1605_s10 = smov %s1596_s5 }
 0x233   :  { %775 = vsyncpa [#allocation3], 1 }
 0x234   :  { %777 = vsyncpa [#allocation3 + $0x1], 1 }
 0x235   :  { %778 = vsyncpa [#allocation4], 1 }
 0x236   :  { %780 = vsyncpa [#allocation4 + $0x1], 1 }

</bundles_post_ra>
